<compile_context>
chip_gen: v7x
topology: tpu7x:2x2x1
jax: 0.10.0
libtpu: 0.0.40
codegen_flags: <defaults>
</compile_context>

<pallas_src>
import functools

import numpy as np
import jax
import jax.numpy as jnp
from jax.experimental import pallas as pl
from jax.experimental.pallas import tpu as pltpu

FD = 128          # padded feature width (lanes)
FD2 = 2 * FD      # fused (mu | logvar) encoder width
BN_EPS = 1e-5


# ----------------------------------------------------------------------------
# Kernel: full VAE forward for one (TB, FD) batch tile, weights resident in VMEM
# ----------------------------------------------------------------------------
def _make_vae_kernel(depth):
    def kernel(x_ref, noise_ref, we_ref, be_ref, wd_ref, bd_ref,
               out_ref, mu_ref, lv_ref):
        mxu_dtype = we_ref.dtype  # bf16 operands, f32 accumulation

        # ---------------- encoder: mu & logvar branches fused ----------------
        # layer 0: (TB, FD) @ (FD, 2FD) -> [mu_h | logvar_h]
        x = x_ref[...]
        h = jnp.dot(x.astype(mxu_dtype), we_ref[0, :FD, :],
                    preferred_element_type=jnp.float32)
        h = h + be_ref[pl.ds(0, 1), :]
        if depth > 1:
            h = jnp.maximum(h, 0.0)          # ReLU (BN folded, Dropout eval = id)
        for j in range(1, depth):
            # block-diagonal (2FD, 2FD) weight keeps the two branches independent
            h = jnp.dot(h.astype(mxu_dtype), we_ref[j],
                        preferred_element_type=jnp.float32)
            h = h + be_ref[pl.ds(j, 1), :]
            if j < depth - 1:
                h = jnp.maximum(h, 0.0)

        mu = h[:, :FD]
        logvar = h[:, FD:]

        # ---------------- reparameterisation ---------------------------------
        # noise lanes [latent:latent+4] carry (team, ballPosition, ballControl);
        # there mu == 0 and logvar == 0 exactly, so z == extras (== torch.cat).
        std = jnp.exp(0.5 * logvar)
        z = noise_ref[...] * std + mu

        # ---------------- decoder --------------------------------------------
        d = z
        for j in range(depth):
            d = jnp.dot(d.astype(mxu_dtype), wd_ref[j],
                        preferred_element_type=jnp.float32)
            d = d + bd_ref[pl.ds(j, 1), :]
            if j < depth - 1:
                d = jnp.maximum(d, 0.0)

        out_ref[...] = jax.nn.sigmoid(d)
        mu_ref[...] = mu
        lv_ref[...] = logvar

    return kernel


# ----------------------------------------------------------------------------
# Parameter construction (mirrors torch module shapes & default init)
# ----------------------------------------------------------------------------
def _linear_init(key, fan_in, fan_out):
    k1, k2 = jax.random.split(key)
    bound = 1.0 / float(fan_in) ** 0.5
    w = jax.random.uniform(k1, (fan_in, fan_out), jnp.float32, -bound, bound)
    b = jax.random.uniform(k2, (fan_out,), jnp.float32, -bound, bound)
    return w, b


def _fold_bn_into_next(Ws, bs, dims):
    """Fold eval-mode BatchNorm1d (torch default init) into the following Linear."""
    scale0 = 1.0 / np.sqrt(1.0 + BN_EPS)            # gamma / sqrt(running_var+eps)
    for j in range(1, len(Ws)):
        n = dims[j]
        scale = jnp.full((n,), scale0, jnp.float32)
        shift = jnp.zeros((n,), jnp.float32)        # beta - running_mean * scale
        bs[j] = shift @ Ws[j] + bs[j]
        Ws[j] = scale[:, None] * Ws[j]
    return Ws, bs


def init_vae_params(key, input_size, latent_dims, depth=3,
                    matmul_dtype=jnp.bfloat16):
    assert 0 < latent_dims < input_size
    assert input_size <= FD and latent_dims + 4 <= FD

    step = (input_size - latent_dims) // depth if depth > 0 else 0
    enc_dims = ([input_size] + [input_size - step * i for i in range(1, depth)]
                + [latent_dims])
    lat4 = latent_dims + 4
    dec_dims = [lat4] + [lat4 + step * i for i in range(1, depth)] + [input_size]

    keys = jax.random.split(key, 2 * depth)
    # torch: fc_mu = deepcopy(layers) -> mu and logvar branches start identical.
    enc_W, enc_b = [], []
    for j in range(depth):
        w, b = _linear_init(keys[j], enc_dims[j], enc_dims[j + 1])
        enc_W.append(w); enc_b.append(b)
    dec_W, dec_b = [], []
    for j in range(depth):
        w, b = _linear_init(keys[depth + j], dec_dims[j], dec_dims[j + 1])
        dec_W.append(w); dec_b.append(b)

    raw = {"enc_W": list(enc_W), "enc_b": list(enc_b),
           "dec_W": list(dec_W), "dec_b": list(dec_b)}

    # Fold eval-mode BN into the following Linear layer.
    enc_Wf, enc_bf = _fold_bn_into_next(list(enc_W), list(enc_b), enc_dims)
    dec_Wf, dec_bf = _fold_bn_into_next(list(dec_W), list(dec_b), dec_dims)

    # Fused + zero-padded encoder weights (block-diagonal, mu half | logvar half).
    We = np.zeros((depth, FD2, FD2), np.float32)
    be = np.zeros((depth, FD2), np.float32)
    for j in range(depth):
        w = np.asarray(enc_Wf[j]); b = np.asarray(enc_bf[j])
        fi, fo = w.shape
        if j == 0:                       # shared input x lives in lanes [0:FD]
            We[j, :fi, :fo] = w
            We[j, :fi, FD:FD + fo] = w
        else:
            We[j, :fi, :fo] = w
            We[j, FD:FD + fi, FD:FD + fo] = w
        be[j, :fo] = b
        be[j, FD:FD + fo] = b

    Wd = np.zeros((depth, FD, FD), np.float32)
    bd = np.zeros((depth, FD), np.float32)
    for j in range(depth):
        w = np.asarray(dec_Wf[j]); b = np.asarray(dec_bf[j])
        fi, fo = w.shape
        Wd[j, :fi, :fo] = w
        bd[j, :fo] = b

    params = {
        "W_enc": jnp.asarray(We, matmul_dtype),      # (depth, 256, 256) bf16
        "b_enc": jnp.asarray(be, jnp.float32),       # (depth, 256)      f32
        "W_dec": jnp.asarray(Wd, matmul_dtype),      # (depth, 128, 128) bf16
        "b_dec": jnp.asarray(bd, jnp.float32),       # (depth, 128)      f32
    }
    config = {"input_size": input_size, "latent_dims": latent_dims, "depth": depth}
    return params, config, raw


# ----------------------------------------------------------------------------
# Jitted end-to-end forward
# ----------------------------------------------------------------------------
@functools.partial(jax.jit,
                   static_argnames=("input_size", "latent", "depth", "tb"))
def _vae_forward_jit(x, team, ballPosition, ballControl, rng_key,
                     W_enc, b_enc, W_dec, b_dec,
                     *, input_size, latent, depth, tb):
    B = x.shape[0]
    b_pad = ((B + tb - 1) // tb) * tb
    grid = (b_pad // tb,)

    x_pad = jnp.zeros((b_pad, FD), jnp.float32)
    x_pad = x_pad.at[:B, :input_size].set(x.astype(jnp.float32))

    # eps in lanes [0:latent]; decoder extras packed in lanes [latent:latent+4].
    eps = jax.random.normal(rng_key, (B, latent), jnp.float32)
    extras = jnp.concatenate(
        [team[:, None], ballPosition, ballControl[:, None]], axis=-1
    ).astype(jnp.float32)
    noise = jnp.zeros((b_pad, FD), jnp.float32)
    noise = noise.at[:B, :latent].set(eps)
    noise = noise.at[:B, latent:latent + 4].set(extras)

    w_bytes = (W_enc.size * W_enc.dtype.itemsize
               + W_dec.size * W_dec.dtype.itemsize
               + b_enc.size * 4 + b_dec.size * 4)
    cost = pl.CostEstimate(
        flops=2 * b_pad * depth * (FD2 * FD2 + FD * FD),
        transcendentals=2 * b_pad * FD,
        bytes_accessed=w_bytes + 5 * b_pad * FD * 4,
    )

    out_pad, mu_pad, lv_pad = pl.pallas_call(
        _make_vae_kernel(depth),
        out_shape=(
            jax.ShapeDtypeStruct((b_pad, FD), jnp.float32),
            jax.ShapeDtypeStruct((b_pad, FD), jnp.float32),
            jax.ShapeDtypeStruct((b_pad, FD), jnp.float32),
        ),
        grid_spec=pltpu.PrefetchScalarGridSpec(
            num_scalar_prefetch=0,
            grid=grid,
            in_specs=[
                pl.BlockSpec((tb, FD), lambda i: (i, 0)),              # x tile
                pl.BlockSpec((tb, FD), lambda i: (i, 0)),              # noise tile
                pl.BlockSpec((depth, FD2, FD2), lambda i: (0, 0, 0)),  # W_enc (resident)
                pl.BlockSpec((depth, FD2), lambda i: (0, 0)),          # b_enc
                pl.BlockSpec((depth, FD, FD), lambda i: (0, 0, 0)),    # W_dec
                pl.BlockSpec((depth, FD), lambda i: (0, 0)),           # b_dec
            ],
            out_specs=(
                pl.BlockSpec((tb, FD), lambda i: (i, 0)),
                pl.BlockSpec((tb, FD), lambda i: (i, 0)),
                pl.BlockSpec((tb, FD), lambda i: (i, 0)),
            ),
        ),
        compiler_params=pltpu.CompilerParams(
            dimension_semantics=("parallel",)),
        cost_estimate=cost,
    )(x_pad, noise, W_enc, b_enc, W_dec, b_dec)

    return (out_pad[:B, :input_size],
            mu_pad[:B, :latent],
            lv_pad[:B, :latent])


def vae_forward(params, config, x, team, ballPosition, ballControl, rng_key):
    """Mirrors VariationalAutoencoder.forward -> (reconstruction, mu, logvar)."""
    B = x.shape[0]
    # Batch tile: fill MXU rows (up to 256) without over-padding tiny batches.
    tb = min(256, ((B + 7) // 8) * 8)
    return _vae_forward_jit(
        x, team, ballPosition, ballControl, rng_key,
        params["W_enc"], params["b_enc"], params["W_dec"], params["b_dec"],
        input_size=config["input_size"], latent=config["latent_dims"],
        depth=config["depth"], tb=tb)


# ----------------------------------------------------------------------------
# Pure-JAX reference (unfused, unpadded, f32) for validation
# ----------------------------------------------------------------------------
def reference_forward(raw, config, x, team, ballPosition, ballControl, rng_key):
    depth = config["depth"]; latent = config["latent_dims"]
    bn_scale = 1.0 / np.sqrt(1.0 + BN_EPS)

    def branch(h, Ws, bs):
        for j in range(depth):
            h = h @ Ws[j] + bs[j]
            if j < depth - 1:
                h = jnp.maximum(h, 0.0) * bn_scale   # ReLU + eval-mode BN
        return h

    mu = branch(x, raw["enc_W"], raw["enc_b"])
    logvar = branch(x, raw["enc_W"], raw["enc_b"])   # identical initial weights
    eps = jax.random.normal(rng_key, (x.shape[0], latent), jnp.float32)
    z = eps * jnp.exp(0.5 * logvar) + mu
    d = jnp.concatenate([z, team[:, None], ballPosition, ballControl[:, None]], -1)
    recon = jax.nn.sigmoid(branch(d, raw["dec_W"], raw["dec_b"]))
    return recon, mu, logvar


# ----------------------------------------------------------------------------
if __name__ == "__main__":
    input_size, latent_dims, depth = 64, 8, 3
    B = 8

    key = jax.random.PRNGKey(0)
    kp, kx, kt, kb, kc, ke = jax.random.split(key, 6)

    params, config, raw = init_vae_params(kp, input_size, latent_dims, depth)

    x = jax.random.normal(kx, (B, input_size), jnp.float32)
    team = jax.random.normal(kt, (B,), jnp.float32)
    ballPosition = jax.random.normal(kb, (B, 2), jnp.float32)
    ballControl = jax.random.normal(kc, (B,), jnp.float32)

    recon, mu, logvar = vae_forward(params, config, x, team, ballPosition,
                                    ballControl, ke)
    recon, mu, logvar = jax.block_until_ready((recon, mu, logvar))

    assert recon.shape == (B, input_size)
    assert mu.shape == (B, latent_dims)
    assert logvar.shape == (B, latent_dims)
    assert bool(jnp.all(jnp.isfinite(recon)))
    assert bool(jnp.all((recon >= 0.0) & (recon <= 1.0)))   # sigmoid output

    # Cross-check against a pure-JAX f32 reference (bf16 MXU operands -> loose tol)
    r_ref, mu_r, lv_r = reference_forward(raw, config, x, team, ballPosition,
                                          ballControl, ke)
    assert bool(jnp.max(jnp.abs(recon - r_ref)) < 5e-2)
    assert bool(jnp.max(jnp.abs(mu - mu_r)) < 5e-2)
    assert bool(jnp.max(jnp.abs(logvar - lv_r)) < 5e-2)

    print("KERNEL_OK")
</pallas_src>

<mosaic_0001>
module attributes {stable_mosaic.version = 11 : i64} {
  func.func @kernel(%arg0: i32, %arg1: memref<8x128xf32, #tpu.memory_space<vmem>>, %arg2: memref<8x128xf32, #tpu.memory_space<vmem>>, %arg3: memref<3x256x256xbf16, #tpu.memory_space<vmem>>, %arg4: memref<3x256xf32, #tpu.memory_space<vmem>>, %arg5: memref<3x128x128xbf16, #tpu.memory_space<vmem>>, %arg6: memref<3x128xf32, #tpu.memory_space<vmem>>, %arg7: memref<8x128xf32, #tpu.memory_space<vmem>>, %arg8: memref<8x128xf32, #tpu.memory_space<vmem>>, %arg9: memref<8x128xf32, #tpu.memory_space<vmem>>) attributes {dimension_semantics = [#tpu.dimension_semantics<parallel>], iteration_bounds = array<i64: 1>, scalar_prefetch = 0 : i64, scratch_operands = 0 : i64, tpu.core_type = #tpu.core_type<tc>, window_params = [{transform_indices = @transform_0, window_bounds = array<i64: 8, 128>}, {transform_indices = @transform_1, window_bounds = array<i64: 8, 128>}, {pipeline_mode = #tpu.pipeline_mode<synchronous>, transform_indices = @transform_2, window_bounds = array<i64: 3, 256, 256>}, {pipeline_mode = #tpu.pipeline_mode<synchronous>, transform_indices = @transform_3, window_bounds = array<i64: 3, 256>}, {pipeline_mode = #tpu.pipeline_mode<synchronous>, transform_indices = @transform_4, window_bounds = array<i64: 3, 128, 128>}, {pipeline_mode = #tpu.pipeline_mode<synchronous>, transform_indices = @transform_5, window_bounds = array<i64: 3, 128>}, {transform_indices = @transform_6, window_bounds = array<i64: 8, 128>}, {transform_indices = @transform_7, window_bounds = array<i64: 8, 128>}, {transform_indices = @transform_8, window_bounds = array<i64: 8, 128>}]} {
    %c0 = arith.constant 0 : index
    %c0_0 = arith.constant 0 : index
    %0 = vector.load %arg1[%c0, %c0_0] : memref<8x128xf32, #tpu.memory_space<vmem>>, vector<8x128xf32>
    %1 = arith.truncf %0 : vector<8x128xf32> to vector<8x128xbf16>
    %c0_1 = arith.constant 0 : index
    %c0_2 = arith.constant 0 : index
    %c0_3 = arith.constant 0 : index
    %2 = vector.load %arg3[%c0_1, %c0_2, %c0_3] : memref<3x256x256xbf16, #tpu.memory_space<vmem>>, vector<1x128x256xbf16>
    %3 = vector.shape_cast %2 : vector<1x128x256xbf16> to vector<128x256xbf16>
    %cst = arith.constant dense<0.000000e+00> : vector<8x256xf32>
    %4 = tpu.matmul %1, %3, %cst {dimension_numbers = #tpu.dot_dimension_numbers<[1], [0], [0], [1], [0, 0, 1, 1], [], []>} : vector<8x128xbf16>, vector<128x256xbf16>, vector<8x256xf32> -> vector<8x256xf32>
    %c0_4 = arith.constant 0 : index
    %c0_5 = arith.constant 0 : index
    %5 = vector.load %arg4[%c0_4, %c0_5] : memref<3x256xf32, #tpu.memory_space<vmem>>, vector<1x256xf32>
    %6 = vector.broadcast %5 : vector<1x256xf32> to vector<8x256xf32>
    %7 = arith.addf %4, %6 : vector<8x256xf32>
    %cst_6 = arith.constant 0.000000e+00 : f32
    %8 = vector.broadcast %cst_6 : f32 to vector<8x256xf32>
    %9 = arith.maximumf %7, %8 : vector<8x256xf32>
    %10 = arith.truncf %9 : vector<8x256xf32> to vector<8x256xbf16>
    %c1 = arith.constant 1 : index
    %c0_7 = arith.constant 0 : index
    %c0_8 = arith.constant 0 : index
    %11 = vector.load %arg3[%c1, %c0_7, %c0_8] : memref<3x256x256xbf16, #tpu.memory_space<vmem>>, vector<1x256x256xbf16>
    %12 = vector.shape_cast %11 : vector<1x256x256xbf16> to vector<256x256xbf16>
    %cst_9 = arith.constant dense<0.000000e+00> : vector<8x256xf32>
    %13 = tpu.matmul %10, %12, %cst_9 {dimension_numbers = #tpu.dot_dimension_numbers<[1], [0], [0], [1], [0, 0, 1, 1], [], []>} : vector<8x256xbf16>, vector<256x256xbf16>, vector<8x256xf32> -> vector<8x256xf32>
    %c1_10 = arith.constant 1 : index
    %c0_11 = arith.constant 0 : index
    %14 = vector.load %arg4[%c1_10, %c0_11] : memref<3x256xf32, #tpu.memory_space<vmem>>, vector<1x256xf32>
    %15 = vector.broadcast %14 : vector<1x256xf32> to vector<8x256xf32>
    %16 = arith.addf %13, %15 : vector<8x256xf32>
    %cst_12 = arith.constant 0.000000e+00 : f32
    %17 = vector.broadcast %cst_12 : f32 to vector<8x256xf32>
    %18 = arith.maximumf %16, %17 : vector<8x256xf32>
    %19 = arith.truncf %18 : vector<8x256xf32> to vector<8x256xbf16>
    %c2 = arith.constant 2 : index
    %c0_13 = arith.constant 0 : index
    %c0_14 = arith.constant 0 : index
    %20 = vector.load %arg3[%c2, %c0_13, %c0_14] : memref<3x256x256xbf16, #tpu.memory_space<vmem>>, vector<1x256x256xbf16>
    %21 = vector.shape_cast %20 : vector<1x256x256xbf16> to vector<256x256xbf16>
    %cst_15 = arith.constant dense<0.000000e+00> : vector<8x256xf32>
    %22 = tpu.matmul %19, %21, %cst_15 {dimension_numbers = #tpu.dot_dimension_numbers<[1], [0], [0], [1], [0, 0, 1, 1], [], []>} : vector<8x256xbf16>, vector<256x256xbf16>, vector<8x256xf32> -> vector<8x256xf32>
    %c2_16 = arith.constant 2 : index
    %c0_17 = arith.constant 0 : index
    %23 = vector.load %arg4[%c2_16, %c0_17] : memref<3x256xf32, #tpu.memory_space<vmem>>, vector<1x256xf32>
    %24 = vector.broadcast %23 : vector<1x256xf32> to vector<8x256xf32>
    %25 = arith.addf %22, %24 : vector<8x256xf32>
    %26 = vector.extract_strided_slice %25 {offsets = [0, 0], sizes = [8, 128], strides = [1, 1]} : vector<8x256xf32> to vector<8x128xf32>
    %27 = vector.extract_strided_slice %25 {offsets = [0, 128], sizes = [8, 128], strides = [1, 1]} : vector<8x256xf32> to vector<8x128xf32>
    %cst_18 = arith.constant 5.000000e-01 : f32
    %28 = vector.broadcast %cst_18 : f32 to vector<8x128xf32>
    %29 = arith.mulf %28, %27 : vector<8x128xf32>
    %30 = math.exp %29 : vector<8x128xf32>
    %c0_19 = arith.constant 0 : index
    %c0_20 = arith.constant 0 : index
    %31 = vector.load %arg2[%c0_19, %c0_20] : memref<8x128xf32, #tpu.memory_space<vmem>>, vector<8x128xf32>
    %32 = arith.mulf %31, %30 : vector<8x128xf32>
    %33 = arith.addf %32, %26 : vector<8x128xf32>
    %34 = arith.truncf %33 : vector<8x128xf32> to vector<8x128xbf16>
    %c0_21 = arith.constant 0 : index
    %c0_22 = arith.constant 0 : index
    %c0_23 = arith.constant 0 : index
    %35 = vector.load %arg5[%c0_21, %c0_22, %c0_23] : memref<3x128x128xbf16, #tpu.memory_space<vmem>>, vector<1x128x128xbf16>
    %36 = vector.shape_cast %35 : vector<1x128x128xbf16> to vector<128x128xbf16>
    %cst_24 = arith.constant dense<0.000000e+00> : vector<8x128xf32>
    %37 = tpu.matmul %34, %36, %cst_24 {dimension_numbers = #tpu.dot_dimension_numbers<[1], [0], [0], [1], [0, 0, 1, 1], [], []>} : vector<8x128xbf16>, vector<128x128xbf16>, vector<8x128xf32> -> vector<8x128xf32>
    %c0_25 = arith.constant 0 : index
    %c0_26 = arith.constant 0 : index
    %38 = vector.load %arg6[%c0_25, %c0_26] : memref<3x128xf32, #tpu.memory_space<vmem>>, vector<1x128xf32>
    %39 = vector.broadcast %38 : vector<1x128xf32> to vector<8x128xf32>
    %40 = arith.addf %37, %39 : vector<8x128xf32>
    %cst_27 = arith.constant 0.000000e+00 : f32
    %41 = vector.broadcast %cst_27 : f32 to vector<8x128xf32>
    %42 = arith.maximumf %40, %41 : vector<8x128xf32>
    %43 = arith.truncf %42 : vector<8x128xf32> to vector<8x128xbf16>
    %c1_28 = arith.constant 1 : index
    %c0_29 = arith.constant 0 : index
    %c0_30 = arith.constant 0 : index
    %44 = vector.load %arg5[%c1_28, %c0_29, %c0_30] : memref<3x128x128xbf16, #tpu.memory_space<vmem>>, vector<1x128x128xbf16>
    %45 = vector.shape_cast %44 : vector<1x128x128xbf16> to vector<128x128xbf16>
    %cst_31 = arith.constant dense<0.000000e+00> : vector<8x128xf32>
    %46 = tpu.matmul %43, %45, %cst_31 {dimension_numbers = #tpu.dot_dimension_numbers<[1], [0], [0], [1], [0, 0, 1, 1], [], []>} : vector<8x128xbf16>, vector<128x128xbf16>, vector<8x128xf32> -> vector<8x128xf32>
    %c1_32 = arith.constant 1 : index
    %c0_33 = arith.constant 0 : index
    %47 = vector.load %arg6[%c1_32, %c0_33] : memref<3x128xf32, #tpu.memory_space<vmem>>, vector<1x128xf32>
    %48 = vector.broadcast %47 : vector<1x128xf32> to vector<8x128xf32>
    %49 = arith.addf %46, %48 : vector<8x128xf32>
    %cst_34 = arith.constant 0.000000e+00 : f32
    %50 = vector.broadcast %cst_34 : f32 to vector<8x128xf32>
    %51 = arith.maximumf %49, %50 : vector<8x128xf32>
    %52 = arith.truncf %51 : vector<8x128xf32> to vector<8x128xbf16>
    %c2_35 = arith.constant 2 : index
    %c0_36 = arith.constant 0 : index
    %c0_37 = arith.constant 0 : index
    %53 = vector.load %arg5[%c2_35, %c0_36, %c0_37] : memref<3x128x128xbf16, #tpu.memory_space<vmem>>, vector<1x128x128xbf16>
    %54 = vector.shape_cast %53 : vector<1x128x128xbf16> to vector<128x128xbf16>
    %cst_38 = arith.constant dense<0.000000e+00> : vector<8x128xf32>
    %55 = tpu.matmul %52, %54, %cst_38 {dimension_numbers = #tpu.dot_dimension_numbers<[1], [0], [0], [1], [0, 0, 1, 1], [], []>} : vector<8x128xbf16>, vector<128x128xbf16>, vector<8x128xf32> -> vector<8x128xf32>
    %c2_39 = arith.constant 2 : index
    %c0_40 = arith.constant 0 : index
    %56 = vector.load %arg6[%c2_39, %c0_40] : memref<3x128xf32, #tpu.memory_space<vmem>>, vector<1x128xf32>
    %57 = vector.broadcast %56 : vector<1x128xf32> to vector<8x128xf32>
    %58 = arith.addf %55, %57 : vector<8x128xf32>
    %59 = arith.negf %58 : vector<8x128xf32>
    %60 = math.exp %59 : vector<8x128xf32>
    %cst_41 = arith.constant 1.000000e+00 : f32
    %61 = vector.broadcast %cst_41 : f32 to vector<8x128xf32>
    %62 = arith.addf %61, %60 : vector<8x128xf32>
    %63 = arith.divf %61, %62 : vector<8x128xf32>
    %c0_42 = arith.constant 0 : index
    %c0_43 = arith.constant 0 : index
    %64 = vector.load %arg7[%c0_42, %c0_43] : memref<8x128xf32, #tpu.memory_space<vmem>>, vector<8x128xf32>
    tpu.vector_store %arg7[%c0_42, %c0_43], %63 {strides = array<i32>} : memref<8x128xf32, #tpu.memory_space<vmem>>, vector<8x128xf32>,
    %c0_44 = arith.constant 0 : index
    %c0_45 = arith.constant 0 : index
    %65 = vector.load %arg8[%c0_44, %c0_45] : memref<8x128xf32, #tpu.memory_space<vmem>>, vector<8x128xf32>
    tpu.vector_store %arg8[%c0_44, %c0_45], %26 {strides = array<i32>} : memref<8x128xf32, #tpu.memory_space<vmem>>, vector<8x128xf32>,
    %c0_46 = arith.constant 0 : index
    %c0_47 = arith.constant 0 : index
    %66 = vector.load %arg9[%c0_46, %c0_47] : memref<8x128xf32, #tpu.memory_space<vmem>>, vector<8x128xf32>
    tpu.vector_store %arg9[%c0_46, %c0_47], %27 {strides = array<i32>} : memref<8x128xf32, #tpu.memory_space<vmem>>, vector<8x128xf32>,
    return
  }
  func.func @transform_0(%arg0: i32) -> (i32, i32) {
    %c0_i32 = arith.constant 0 : i32
    %c0_i32_0 = arith.constant 0 : i32
    return %arg0, %c0_i32 : i32, i32
  }
  func.func @transform_1(%arg0: i32) -> (i32, i32) {
    %c0_i32 = arith.constant 0 : i32
    %c0_i32_0 = arith.constant 0 : i32
    return %arg0, %c0_i32 : i32, i32
  }
  func.func @transform_2(%arg0: i32) -> (i32, i32, i32) {
    %c0_i32 = arith.constant 0 : i32
    %c0_i32_0 = arith.constant 0 : i32
    %c0_i32_1 = arith.constant 0 : i32
    %c0_i32_2 = arith.constant 0 : i32
    return %c0_i32, %c0_i32_0, %c0_i32_1 : i32, i32, i32
  }
  func.func @transform_3(%arg0: i32) -> (i32, i32) {
    %c0_i32 = arith.constant 0 : i32
    %c0_i32_0 = arith.constant 0 : i32
    %c0_i32_1 = arith.constant 0 : i32
    return %c0_i32, %c0_i32_0 : i32, i32
  }
  func.func @transform_4(%arg0: i32) -> (i32, i32, i32) {
    %c0_i32 = arith.constant 0 : i32
    %c0_i32_0 = arith.constant 0 : i32
    %c0_i32_1 = arith.constant 0 : i32
    %c0_i32_2 = arith.constant 0 : i32
    return %c0_i32, %c0_i32_0, %c0_i32_1 : i32, i32, i32
  }
  func.func @transform_5(%arg0: i32) -> (i32, i32) {
    %c0_i32 = arith.constant 0 : i32
    %c0_i32_0 = arith.constant 0 : i32
    %c0_i32_1 = arith.constant 0 : i32
    return %c0_i32, %c0_i32_0 : i32, i32
  }
  func.func @transform_6(%arg0: i32) -> (i32, i32) {
    %c0_i32 = arith.constant 0 : i32
    %c0_i32_0 = arith.constant 0 : i32
    return %arg0, %c0_i32 : i32, i32
  }
  func.func @transform_7(%arg0: i32) -> (i32, i32) {
    %c0_i32 = arith.constant 0 : i32
    %c0_i32_0 = arith.constant 0 : i32
    return %arg0, %c0_i32 : i32, i32
  }
  func.func @transform_8(%arg0: i32) -> (i32, i32) {
    %c0_i32 = arith.constant 0 : i32
    %c0_i32_0 = arith.constant 0 : i32
    return %arg0, %c0_i32 : i32, i32
  }
}

</mosaic_0001>

<bundles_post_ra>
// kernel: _vae_forward_jit.1
= control target key start
LH: loop header
LB: loop body
LE: loop exit
PB: predicated region body
PF: predicated region fallthrough
CT: control target
= control target key end

     0   :  { %14 = vsyncpa [#allocation3], 0  ;;  %s1807_s0 = inlined_call_operand.vmem [shape: f32[8,128], index: 0, kind: input, shape index: {}]   ;;  %s1808_s1 = inlined_call_operand.vmem [shape: f32[8,128], index: 1, kind: input, shape index: {}]   ;;  %s1809_s2 = inlined_call_operand.hbm [shape: bf16[3,256,256], index: 2, kind: input, shape index: {}]   ;;  %s1810_s3 = inlined_call_operand.vmem [shape: f32[3,256], index: 3, kind: input, shape index: {}]   ;;  %s1811_s4 = inlined_call_operand.vmem [shape: bf16[3,128,128], index: 4, kind: input, shape index: {}]   ;;  %s1812_s5 = inlined_call_operand.vmem [shape: f32[3,128], index: 5, kind: input, shape index: {}]   ;;  %s1813_s6 = inlined_call_operand.hbm [shape: f32[8,128], index: 6, kind: output, shape index: {0}]   ;;  %s1814_s7 = inlined_call_operand.hbm [shape: f32[8,128], index: 7, kind: output, shape index: {1}]   ;;  %s1815_s8 = inlined_call_operand.hbm [shape: f32[8,128], index: 8, kind: output, shape index: {2}]  }
   0x1   :  { %15 = vsyncpa [#allocation4], 0 }
   0x2   :  { %16 = vsyncpa [#allocation7], 0  ;;  %s1569_s27 = smov [#allocation2]   ;;  %s1475_s9 = scalar_lea.hbm %s1809_s2, 12288 }
   0x3   :  { %s26_s28 = sshll.u32 %s1569_s27, 4  ;;  %p1476_p0 = scmp.ne.s32.totalorder %s1809_s2, %s1475_s9  ;;  %s27_s28 = int_to_ptr.vmem [resolvable:$true] %s26_s28 }
   0x4   :  { %p1479_p1 = scmp.lt.u32.totalorder %s1475_s9, %s1809_s2 }
   0x6   :  { %p1481_p2 = pnand %p1479_p1, %p1476_p0 }
   0x8   :  { %1484 = shalt.err (!%p1481_p2)
}
   0x9   :  { %s1485_s14 = scalar_lea.vmem %s27_s28, 12288  ;;  %p1490_p4 = scmp.lt.s32.totalorder %s27_s28, %s27_s28 }
   0xa   :  { %p1486_p3 = scmp.ne.s32.totalorder %s27_s28, %s1485_s14  ;;  %p1491_p5 = scmp.lt.s32.totalorder %s1485_s14, %s1485_s14 }
   0xc   :  { %p1492_p6 = por %p1491_p5, %p1490_p4 }
   0xe   :  { %p1493_p7 = pnand %p1492_p6, %p1486_p3 }
  0x10   :  { %1496 = shalt.err (!%p1493_p7)
}
  0x11   :  { %s1570_s15 = smov 128   ;;  %s1571_s16 = smov 8  }
  0x12   :  { %32 = dma.hbm_to_vmem [thread:$0]  %s1809_s2, 12288, %s27_s28, [#allocation3], %s1570_s15, %s1570_s15, %s1571_s16  }
  0x13   :  { %1563 = dma.done.wait [#allocation3], 12288  }
  0x14   :  { %1564 = vsyncadd [#allocation3], 4294955008  ;;  %v1572_v0 = vmov 0   ;;  %v1325_v1 = vld [vmem:[#allocation2 + $0x4] ss:$8 sps:$4 sm:$0xff]   ;;  %vm1574_vm0 = vmmov 0  }
  0x15   :  { %185 = vmatprep.mubr.bf16.mxu0 %v1572_v0  ;;  %v1327_v2 = vld [vmem:[#allocation2] ss:$8 sps:$4 sm:$0xff]   ;;  %153 = vmatprep.subr.bf16.mxu0 %v1325_v1  ;;  %v1328_v3 = vld [vmem:[#allocation2 + $0x14] ss:$8 sps:$4 sm:$0xff]   ;;  %v1330_v4 = vld [vmem:[#allocation2 + $0x10] ss:$8 sps:$4 sm:$0xff]  }
  0x16   :  { %154 = vmatpush1.bf16.msra.mxu0 %v1327_v2  ;;  %v1331_v5 = vld [vmem:[#allocation2 + $0x24] ss:$8 sps:$4 sm:$0xff]   ;;  %v1333_v6 = vld [vmem:[#allocation2 + $0x20] ss:$8 sps:$4 sm:$0xff]   ;;  %v1334_v7 = vld [vmem:[#allocation2 + $0x34] ss:$8 sps:$4 sm:$0xff]  }
  0x17   :  { %155 = vmatprep.subr.bf16.mxu0 %v1328_v3  ;;  %v1336_v8 = vld [vmem:[#allocation2 + $0x30] ss:$8 sps:$4 sm:$0xff]   ;;  %v1337_v9 = vld [vmem:[#allocation2 + $0x44] ss:$8 sps:$4 sm:$0xff]   ;;  %v1351_v11 = vld [vmem:[#allocation2 + $0x100] ss:$8 sps:$4 sm:$0xff]  }
  0x18   :  { %v1349_v10 = vld [vmem:[#allocation2 + $0x104] ss:$8 sps:$4 sm:$0xff]   ;;  %v1352_v12 = vld [vmem:[#allocation2 + $0x114] ss:$8 sps:$4 sm:$0xff]   ;;  %v1339_v13 = vld [vmem:[#allocation2 + $0x40] ss:$8 sps:$4 sm:$0xff]  }
  0x19   :  { %404 = vmatprep.subr.bf16.mxu1 %v1349_v10  ;;  %v1354_v14 = vld [vmem:[#allocation2 + $0x110] ss:$8 sps:$4 sm:$0xff]   ;;  %v1355_v15 = vld [vmem:[#allocation2 + $0x124] ss:$8 sps:$4 sm:$0xff]   ;;  %v1340_v16 = vld [vmem:[#allocation2 + $0x54] ss:$8 sps:$4 sm:$0xff]  }
  0x1a   :  { %156 = vmatpush1.bf16.msra.mxu0 %v1330_v4  ;;  %405 = vmatpush1.bf16.msra.mxu1 %v1351_v11  ;;  %v1342_v17 = vld [vmem:[#allocation2 + $0x50] ss:$8 sps:$4 sm:$0xff]   ;;  %v1357_v18 = vld [vmem:[#allocation2 + $0x120] ss:$8 sps:$4 sm:$0xff]   ;;  %v1358_v19 = vld [vmem:[#allocation2 + $0x134] ss:$8 sps:$4 sm:$0xff]  }
  0x1b   :  { %157 = vmatprep.subr.bf16.mxu0 %v1331_v5  ;;  %406 = vmatprep.subr.bf16.mxu1 %v1352_v12  ;;  %v1343_v20 = vld [vmem:[#allocation2 + $0x64] ss:$8 sps:$4 sm:$0xff]   ;;  %v1345_v21 = vld [vmem:[#allocation2 + $0x60] ss:$8 sps:$4 sm:$0xff]   ;;  %v1360_v22 = vld [vmem:[#allocation2 + $0x130] ss:$8 sps:$4 sm:$0xff]  }
  0x1c   :  { %v1361_v23 = vld [vmem:[#allocation2 + $0x144] ss:$8 sps:$4 sm:$0xff]   ;;  %v1346_v24 = vld [vmem:[#allocation2 + $0x74] ss:$8 sps:$4 sm:$0xff]   ;;  %v1348_v25 = vld [vmem:[#allocation2 + $0x70] ss:$8 sps:$4 sm:$0xff]  }
  0x1d   :  { %v43_v26 = vld [vmem:[%s1807_s0] sm:$0xff]  ;;  %v1364_v28 = vld [vmem:[#allocation2 + $0x154] ss:$8 sps:$4 sm:$0xff]   ;;  %v1366_v29 = vld [vmem:[#allocation2 + $0x150] ss:$8 sps:$4 sm:$0xff]   ;;  %s1575_s29 = smov [#allocation6]  }
  0x1e   :  { %158 = vmatpush1.bf16.msra.mxu0 %v1333_v6  ;;  %407 = vmatpush1.bf16.msra.mxu1 %v1354_v14  ;;  %v1363_v27 = vld [vmem:[#allocation2 + $0x140] ss:$8 sps:$4 sm:$0xff]   ;;  %v44_v30 = vpack.c.bf16 %v43_v26, %v43_v26  ;;  %v1367_v31 = vld [vmem:[#allocation2 + $0x164] ss:$8 sps:$4 sm:$0xff]   ;;  %v1370_v33 = vld [vmem:[#allocation2 + $0x174] ss:$8 sps:$4 sm:$0xff]  }
  0x1f   :  { %159 = vmatprep.subr.bf16.mxu0 %v1334_v7  ;;  %408 = vmatprep.subr.bf16.mxu1 %v1355_v15  ;;  %v1369_v32 = vld [vmem:[#allocation2 + $0x160] ss:$8 sps:$4 sm:$0xff]   ;;  %v1372_v34 = vld [vmem:[#allocation2 + $0x170] ss:$8 sps:$4 sm:$0xff]   ;;  %v1373_v35 = vld [vmem:[#allocation2 + $0x184] ss:$8 sps:$4 sm:$0xff]   ;;  %v63_v15 = vlaneseq }
  0x20   :  { %v1375_v36 = vld [vmem:[#allocation2 + $0x180] ss:$8 sps:$4 sm:$0xff]   ;;  %v1376_v37 = vld [vmem:[#allocation2 + $0x194] ss:$8 sps:$4 sm:$0xff]   ;;  %v1378_v38 = vld [vmem:[#allocation2 + $0x190] ss:$8 sps:$4 sm:$0xff]  }
  0x21   :  { %v1379_v39 = vld [vmem:[#allocation2 + $0x1a4] ss:$8 sps:$4 sm:$0xff]   ;;  %v1381_v40 = vld [vmem:[#allocation2 + $0x1a0] ss:$8 sps:$4 sm:$0xff]   ;;  %v1382_v41 = vld [vmem:[#allocation2 + $0x1b4] ss:$8 sps:$4 sm:$0xff]  }
  0x22   :  { %160 = vmatpush1.bf16.msra.mxu0 %v1336_v8  ;;  %409 = vmatpush1.bf16.msra.mxu1 %v1357_v18  ;;  %v1384_v42 = vld [vmem:[#allocation2 + $0x1b0] ss:$8 sps:$4 sm:$0xff]   ;;  %v1385_v43 = vld [vmem:[#allocation2 + $0x1c4] ss:$8 sps:$4 sm:$0xff]   ;;  %v1387_v44 = vld [vmem:[#allocation2 + $0x1c0] ss:$8 sps:$4 sm:$0xff]  }
  0x23   :  { %161 = vmatprep.subr.bf16.mxu0 %v1337_v9  ;;  %410 = vmatprep.subr.bf16.mxu1 %v1358_v19  ;;  %v1388_v45 = vld [vmem:[#allocation2 + $0x1d4] ss:$8 sps:$4 sm:$0xff]   ;;  %v1390_v46 = vld [vmem:[#allocation2 + $0x1d0] ss:$8 sps:$4 sm:$0xff]   ;;  %v1391_v47 = vld [vmem:[#allocation2 + $0x1e4] ss:$8 sps:$4 sm:$0xff]  }
  0x24   :  { %v1393_v48 = vld [vmem:[#allocation2 + $0x1e0] ss:$8 sps:$4 sm:$0xff]   ;;  %v1394_v49 = vld [vmem:[#allocation2 + $0x1f4] ss:$8 sps:$4 sm:$0xff]   ;;  %v1396_v50 = vld [vmem:[#allocation2 + $0x1f0] ss:$8 sps:$4 sm:$0xff]  }
  0x25   :  { %v1397_v51 = vld [vmem:[#allocation2 + $0x200] ss:$8 sps:$4 sm:$0xff]   ;;  %v1399_v52 = vld [vmem:[#allocation2 + $0x204] ss:$8 sps:$4 sm:$0xff]   ;;  %v1402_v53 = vld [vmem:[#allocation2 + $0x214] ss:$8 sps:$4 sm:$0xff]  }
  0x26   :  { %162 = vmatpush1.bf16.msra.mxu0 %v1339_v13  ;;  %411 = vmatpush1.bf16.msra.mxu1 %v1360_v22  ;;  %v1400_v54 = vld [vmem:[#allocation2 + $0x210] ss:$8 sps:$4 sm:$0xff]   ;;  %v1405_v55 = vld [vmem:[#allocation2 + $0x224] ss:$8 sps:$4 sm:$0xff]   ;;  %v1403_v56 = vld [vmem:[#allocation2 + $0x220] ss:$8 sps:$4 sm:$0xff]  }
  0x27   :  { %163 = vmatprep.subr.bf16.mxu0 %v1340_v16  ;;  %412 = vmatprep.subr.bf16.mxu1 %v1361_v23  ;;  %v1408_v57 = vld [vmem:[#allocation2 + $0x234] ss:$8 sps:$4 sm:$0xff]   ;;  %v1406_v58 = vld [vmem:[#allocation2 + $0x230] ss:$8 sps:$4 sm:$0xff]   ;;  %v1411_v59 = vld [vmem:[#allocation2 + $0x244] ss:$8 sps:$4 sm:$0xff]  }
  0x28   :  { %v1409_v60 = vld [vmem:[#allocation2 + $0x240] ss:$8 sps:$4 sm:$0xff]   ;;  %v1414_v61 = vld [vmem:[#allocation2 + $0x254] ss:$8 sps:$4 sm:$0xff]   ;;  %v1412_v62 = vld [vmem:[#allocation2 + $0x250] ss:$8 sps:$4 sm:$0xff]  }
  0x29   :  { %v1417_v63 = vld [vmem:[#allocation2 + $0x264] ss:$8 sps:$4 sm:$0xff]   ;;  %v1415_v0 = vld [vmem:[#allocation2 + $0x260] ss:$8 sps:$4 sm:$0xff]   ;;  %v1420_v1 = vld [vmem:[#allocation2 + $0x274] ss:$8 sps:$4 sm:$0xff]  }
  0x2a   :  { %164 = vmatpush1.bf16.msra.mxu0 %v1342_v17  ;;  %413 = vmatpush1.bf16.msra.mxu1 %v1363_v27  ;;  %v1418_v2 = vld [vmem:[#allocation2 + $0x270] ss:$8 sps:$4 sm:$0xff]   ;;  %v1423_v3 = vld [vmem:[#allocation2 + $0x284] ss:$8 sps:$4 sm:$0xff]   ;;  %v1421_v4 = vld [vmem:[#allocation2 + $0x280] ss:$8 sps:$4 sm:$0xff]  }
  0x2b   :  { %165 = vmatprep.subr.bf16.mxu0 %v1343_v20  ;;  %414 = vmatprep.subr.bf16.mxu1 %v1364_v28  ;;  %v1426_v5 = vld [vmem:[#allocation2 + $0x294] ss:$8 sps:$4 sm:$0xff]   ;;  %v1424_v6 = vld [vmem:[#allocation2 + $0x290] ss:$8 sps:$4 sm:$0xff]   ;;  %v1429_v7 = vld [vmem:[#allocation2 + $0x2a4] ss:$8 sps:$4 sm:$0xff]  }
  0x2c   :  { %v1427_v8 = vld [vmem:[#allocation2 + $0x2a0] ss:$8 sps:$4 sm:$0xff]   ;;  %v1432_v9 = vld [vmem:[#allocation2 + $0x2b4] ss:$8 sps:$4 sm:$0xff]   ;;  %v1430_v10 = vld [vmem:[#allocation2 + $0x2b0] ss:$8 sps:$4 sm:$0xff]  }
  0x2d   :  { %v1435_v11 = vld [vmem:[#allocation2 + $0x2c4] ss:$8 sps:$4 sm:$0xff]   ;;  %v1433_v12 = vld [vmem:[#allocation2 + $0x2c0] ss:$8 sps:$4 sm:$0xff]   ;;  %v1438_v13 = vld [vmem:[#allocation2 + $0x2d4] ss:$8 sps:$4 sm:$0xff]  }
  0x2e   :  { %166 = vmatpush1.bf16.msra.mxu0 %v1345_v21  ;;  %415 = vmatpush1.bf16.msra.mxu1 %v1366_v29  ;;  %v1436_v14 = vld [vmem:[#allocation2 + $0x2d0] ss:$8 sps:$4 sm:$0xff]   ;;  %v64_v16 = vshrl.u32 %v63_v15, 7  ;;  %v61_v18 = vld [vmem:[%s1810_s3] ss:$4 sm:$0x3] }
  0x2f   :  { %167 = vmatprep.subr.bf16.mxu0 %v1346_v24  ;;  %416 = vmatprep.subr.bf16.mxu1 %v1367_v31  ;;  %s1061_s30 = sshll.u32 %s1575_s29, 4  ;;  %s1062_s30 = int_to_ptr.vmem [resolvable:$true] %s1061_s30 }
  0x30   :  { %v1638_v17 = vsub.s32 0, %v64_v16  ;;  %v1643_v19 = vsub.s32 1, %v64_v16  ;;  %v1459_v16 = vld [vmem:[%s1811_s4 + $0x70] sm:$0xff]   ;;  %p1502_p9 = scmp.lt.s32.totalorder %s1062_s30, %s1062_s30 }
  0x32   :  { %168 = vmatpush1.bf16.msra.mxu0 %v1348_v25  ;;  %417 = vmatpush1.bf16.msra.mxu1 %v1369_v32  ;;  %v66_v20 = vrot.slane %v61_v18, %v1638_v17  ;;  %v70_v21 = vrot.slane %v61_v18, %v1643_v19  ;;  %v1441_v32 = vld [vmem:[#allocation2 + $0x2e4] ss:$8 sps:$4 sm:$0xff]  }
  0x33   :  { %418 = vmatprep.subr.bf16.mxu1 %v1370_v33  ;;  %655 = vmatprep.subr.bf16.mxu0 %v1399_v52  ;;  %v1439_v33 = vld [vmem:[#allocation2 + $0x2e0] ss:$8 sps:$4 sm:$0xff]   ;;  %v1447_v52 = vld [vmem:[%s1811_s4 + $0x10] sm:$0xff]  }
  0x34   :  { %v1461_v18 = vld [vmem:[%s1811_s4 + $0x80] sm:$0xff]  }
  0x35   :  { %186 = vmatmul.mubr.bf16.vlgmr.msra.gmra.mrb[0].mxu0 %v44_v30 }
  0x36   :  { %419 = vmatpush1.bf16.msra.mxu1 %v1372_v34  ;;  %656 = vmatpush1.bf16.msra.mxu0 %v1397_v51  ;;  %v1444_v34 = vld [vmem:[#allocation2 + $0x2f4] ss:$8 sps:$4 sm:$0xff]  }
  0x37   :  { %420 = vmatprep.subr.bf16.mxu1 %v1373_v35  ;;  %657 = vmatprep.subr.bf16.mxu0 %v1402_v53  ;;  %v1442_v35 = vld [vmem:[#allocation2 + $0x2f0] ss:$8 sps:$4 sm:$0xff]  }
  0x38   :  { %v1448_v53 = vld [vmem:[%s1811_s4 + $0x18] sm:$0xff]  }
  0x3a   :  { %421 = vmatpush1.bf16.msra.mxu1 %v1375_v36  ;;  %658 = vmatpush1.bf16.msra.mxu0 %v1400_v54  ;;  %v1445_v36 = vld [vmem:[%s1811_s4] sm:$0xff]  }
  0x3b   :  { %422 = vmatprep.subr.bf16.mxu1 %v1376_v37  ;;  %659 = vmatprep.subr.bf16.mxu0 %v1405_v55  ;;  %v1573_v37 = vmov 0.0   ;;  %v1449_v54 = vld [vmem:[%s1811_s4 + $0x20] sm:$0xff]   ;;  %v1450_v55 = vld [vmem:[%s1811_s4 + $0x28] sm:$0xff]  }
  0x3e   :  { %423 = vmatpush1.bf16.msra.mxu1 %v1378_v38  ;;  %660 = vmatpush1.bf16.msra.mxu0 %v1403_v56  ;;  %v1446_v38 = vld [vmem:[%s1811_s4 + $0x8] sm:$0xff]   ;;  %v1451_v56 = vld [vmem:[%s1811_s4 + $0x30] sm:$0xff]  }
  0x3f   :  { %424 = vmatprep.subr.bf16.mxu1 %v1379_v39  ;;  %661 = vmatprep.subr.bf16.mxu0 %v1408_v57  ;;  %v1103_v39 = vld [vmem:[%s1810_s3 + $0x1] ss:$4 sm:$0x3]  ;;  %v1452_v57 = vld [vmem:[%s1811_s4 + $0x38] sm:$0xff]  }
  0x42   :  { %425 = vmatpush1.bf16.msra.mxu1 %v1381_v40  ;;  %662 = vmatpush1.bf16.msra.mxu0 %v1406_v58  ;;  %v237_v40 = vrot.slane %v1103_v39, %v1638_v17  ;;  %v1453_v58 = vld [vmem:[%s1811_s4 + $0x40] sm:$0xff]  }
  0x43   :  { %426 = vmatprep.subr.bf16.mxu1 %v1382_v41  ;;  %663 = vmatprep.subr.bf16.mxu0 %v1411_v59  ;;  %v241_v41 = vrot.slane %v1103_v39, %v1643_v19  ;;  %v1454_v59 = vld [vmem:[%s1811_s4 + $0x48] sm:$0xff]  }
  0x46   :  { %427 = vmatpush1.bf16.msra.mxu1 %v1384_v42  ;;  %664 = vmatpush1.bf16.msra.mxu0 %v1409_v60  ;;  %v1455_v60 = vld [vmem:[%s1811_s4 + $0x50] sm:$0xff]  }
  0x47   :  { %428 = vmatprep.subr.bf16.mxu1 %v1385_v43  ;;  %665 = vmatprep.subr.bf16.mxu0 %v1414_v61  ;;  %v1456_v61 = vld [vmem:[%s1811_s4 + $0x58] sm:$0xff]  }
  0x4a   :  { %429 = vmatpush1.bf16.msra.mxu1 %v1387_v44  ;;  %666 = vmatpush1.bf16.msra.mxu0 %v1412_v62  ;;  %v1457_v62 = vld [vmem:[%s1811_s4 + $0x60] sm:$0xff]  }
  0x4b   :  { %430 = vmatprep.subr.bf16.mxu1 %v1388_v45  ;;  %667 = vmatprep.subr.bf16.mxu0 %v1417_v63  ;;  %v1458_v63 = vld [vmem:[%s1811_s4 + $0x68] sm:$0xff]  }
  0x4e   :  { %431 = vmatpush1.bf16.msra.mxu1 %v1390_v46  ;;  %668 = vmatpush1.bf16.msra.mxu0 %v1415_v0  ;;  %v1136_v0 = vld [vmem:[%s1810_s3 + $0x2] ss:$4 sm:$0x3]  ;;  %s1497_s3 = scalar_lea.vmem %s1062_s30, 128 }
  0x4f   :  { %432 = vmatprep.subr.bf16.mxu1 %v1391_v47  ;;  %669 = vmatprep.subr.bf16.mxu0 %v1420_v1  ;;  %v488_v1 = vrot.slane %v1136_v0, %v1638_v17  ;;  %v1460_v17 = vld [vmem:[%s1811_s4 + $0x78] sm:$0xff]   ;;  %p1498_p8 = scmp.ne.s32.totalorder %s1062_s30, %s1497_s3  ;;  %p1503_p10 = scmp.lt.s32.totalorder %s1497_s3, %s1497_s3 }
  0x51   :  { %p1504_p11 = por %p1503_p10, %p1502_p9 }
  0x52   :  { %433 = vmatpush1.bf16.msra.mxu1 %v1393_v48  ;;  %670 = vmatpush1.bf16.msra.mxu0 %v1418_v2  ;;  %v492_v2 = vrot.slane %v1136_v0, %v1643_v19  ;;  %v1462_v19 = vld [vmem:[%s1811_s4 + $0x88] sm:$0xff]  }
  0x53   :  { %434 = vmatprep.subr.bf16.mxu1 %v1394_v49  ;;  %671 = vmatprep.subr.bf16.mxu0 %v1423_v3  ;;  %p1505_p12 = pnand %p1504_p11, %p1498_p8 }
  0x56   :  { %435 = vmatpush1.bf16.msra.mxu1 %v1396_v50  ;;  %672 = vmatpush1.bf16.msra.mxu0 %v1421_v4 }
  0x57   :  { %673 = vmatprep.subr.bf16.mxu0 %v1426_v5  ;;  %1256 = vmatprep.subr.bf16.mxu1 %v1573_v37 }
  0x5a   :  { %674 = vmatpush1.bf16.msra.mxu0 %v1424_v6 }
  0x5b   :  { %675 = vmatprep.subr.bf16.mxu0 %v1429_v7 }
  0x5e   :  { %676 = vmatpush1.bf16.msra.mxu0 %v1427_v8 }
  0x5f   :  { %677 = vmatprep.subr.bf16.mxu0 %v1432_v9 }
  0x62   :  { %678 = vmatpush1.bf16.msra.mxu0 %v1430_v10 }
  0x63   :  { %679 = vmatprep.subr.bf16.mxu0 %v1435_v11  ;;  %v699_v11 = vld [vmem:[%s1808_s1] sm:$0xff] }
  0x66   :  { %680 = vmatpush1.bf16.msra.mxu0 %v1433_v12 }
  0x67   :  { %681 = vmatprep.subr.bf16.mxu0 %v1438_v13 }
  0x6a   :  { %682 = vmatpush1.bf16.msra.mxu0 %v1436_v14 }
  0x6b   :  { %683 = vmatprep.subr.bf16.mxu0 %v1441_v32  ;;  %v1467_v32 = vld [vmem:[%s1811_s4 + $0xb0] sm:$0xff]  }
  0x6e   :  { %684 = vmatpush1.bf16.msra.mxu0 %v1439_v33  ;;  %v1468_v33 = vld [vmem:[%s1811_s4 + $0xb8] sm:$0xff]  }
  0x6f   :  { %685 = vmatprep.subr.bf16.mxu0 %v1444_v34  ;;  %v1194_v34 = vld [vmem:[%s1812_s5 + $0x1] ss:$0 sm:$0xff] }
  0x72   :  { %686 = vmatpush1.bf16.msra.mxu0 %v1442_v35 }
  0x73   :  { %1276 = vmatprep.subr.bf16.mxu0 %v1573_v37 }
 0x108   :  { %v187_v22 = vpop.f32.mrb[0].mxu0 }
 0x109   :  { %v188_v23 = vadd.f32 %v187_v22, %v66_v20  ;;  %v189_v24 = vpop.f32.mrb[1].mxu0  ;;  %v1463_v20 = vld [vmem:[%s1811_s4 + $0x90] sm:$0xff]   ;;  %v1465_v22 = vld [vmem:[%s1811_s4 + $0xa0] sm:$0xff]  }
 0x10a   :  { %v190_v25 = vadd.f32 %v189_v24, %v70_v21  ;;  %v191_v26 = vpop.f32.mrb[2].mxu0  ;;  %v1464_v21 = vld [vmem:[%s1811_s4 + $0x98] sm:$0xff]   ;;  %v1169_v24 = vld [vmem:[%s1812_s5] ss:$0 sm:$0xff] }
 0x10b   :  { %v194_v27 = vmax.f32 %v188_v23, 0.0  ;;  %v192_v28 = vpop.f32.mrb[3].mxu0  ;;  %v1466_v23 = vld [vmem:[%s1811_s4 + $0xa8] sm:$0xff]  }
 0x10c   :  { %v195_v29 = vmax.f32 %v190_v25, 0.0 }
 0x10d   :  { %v196_v31 = vpack.c.bf16 %v194_v27, %v194_v27 }
 0x10e   :  { %v197_v30 = vpack.c.bf16 %v195_v29, %v195_v29 }
 0x110   :  { %436 = vmatprep.mubr.bf16.mxu1 %v197_v30 }
 0x111   :  { %437 = vmatmul.mubr.bf16.vlgmr.msra.gmra.mrb[0].mxu1 %v196_v31 }
 0x112   :  { %1257 = vmatpush3.bf16.msra.mxu1 %v1445_v36  ;;  %1272 = vmatprep.mubr.msk.bf16.mxu1 %vm1574_vm0, %v1573_v37 }
 0x113   :  { %1258 = vmatprep.subr.bf16.mxu1 %v1573_v37 }
 0x116   :  { %1259 = vmatpush3.bf16.msra.mxu1 %v1446_v38 }
 0x117   :  { %1260 = vmatprep.subr.bf16.mxu1 %v1573_v37 }
 0x11a   :  { %1261 = vmatpush3.bf16.msra.mxu1 %v1447_v52 }
 0x11b   :  { %1262 = vmatprep.subr.bf16.mxu1 %v1573_v37 }
 0x11e   :  { %1263 = vmatpush3.bf16.msra.mxu1 %v1448_v53 }
 0x11f   :  { %1264 = vmatprep.subr.bf16.mxu1 %v1573_v37 }
 0x122   :  { %1265 = vmatpush3.bf16.msra.mxu1 %v1449_v54 }
 0x123   :  { %1266 = vmatprep.subr.bf16.mxu1 %v1573_v37 }
 0x126   :  { %1267 = vmatpush3.bf16.msra.mxu1 %v1450_v55 }
 0x127   :  { %1268 = vmatprep.subr.bf16.mxu1 %v1573_v37 }
 0x12a   :  { %1269 = vmatpush3.bf16.msra.mxu1 %v1451_v56 }
 0x12b   :  { %1270 = vmatprep.subr.bf16.mxu1 %v1573_v37 }
 0x12e   :  { %1271 = vmatpush3.bf16.msra.mxu1 %v1452_v57 }
 0x12f   :  { %1296 = vmatprep.subr.bf16.mxu1 %v1573_v37 }
 0x1e4   :  { %v438_v42 = vpop.f32.mrb[0].mxu1 }
 0x1e5   :  { %v439_v43 = vadd.f32 %v438_v42, %v237_v40  ;;  %v440_v44 = vpop.f32.mrb[1].mxu1 }
 0x1e6   :  { %v441_v45 = vadd.f32 %v440_v44, %v241_v41  ;;  %v442_v46 = vpop.f32.mrb[2].mxu1 }
 0x1e7   :  { %v445_v47 = vmax.f32 %v439_v43, 0.0  ;;  %v443_v48 = vpop.f32.mrb[3].mxu1 }
 0x1e8   :  { %v446_v49 = vmax.f32 %v441_v45, 0.0 }
 0x1e9   :  { %v447_v51 = vpack.c.bf16 %v445_v47, %v445_v47 }
 0x1ea   :  { %v448_v50 = vpack.c.bf16 %v446_v49, %v446_v49 }
 0x1ec   :  { %687 = vmatprep.mubr.bf16.mxu0 %v448_v50 }
 0x1ed   :  { %688 = vmatmul.mubr.bf16.vlgmr.msra.gmra.mrb[4].mxu0 %v447_v51 }
 0x1ee   :  { %1292 = vmatprep.mubr.msk.bf16.mxu0 %vm1574_vm0, %v1573_v37  ;;  %1277 = vmatpush3.bf16.msra.mxu0 %v1453_v58 }
 0x1ef   :  { %1278 = vmatprep.subr.bf16.mxu0 %v1573_v37 }
 0x1f2   :  { %1279 = vmatpush3.bf16.msra.mxu0 %v1454_v59 }
 0x1f3   :  { %1280 = vmatprep.subr.bf16.mxu0 %v1573_v37 }
 0x1f6   :  { %1281 = vmatpush3.bf16.msra.mxu0 %v1455_v60 }
 0x1f7   :  { %1282 = vmatprep.subr.bf16.mxu0 %v1573_v37 }
 0x1fa   :  { %1283 = vmatpush3.bf16.msra.mxu0 %v1456_v61 }
 0x1fb   :  { %1284 = vmatprep.subr.bf16.mxu0 %v1573_v37 }
 0x1fe   :  { %1285 = vmatpush3.bf16.msra.mxu0 %v1457_v62 }
 0x1ff   :  { %1286 = vmatprep.subr.bf16.mxu0 %v1573_v37 }
 0x202   :  { %1287 = vmatpush3.bf16.msra.mxu0 %v1458_v63 }
 0x203   :  { %1288 = vmatprep.subr.bf16.mxu0 %v1573_v37 }
 0x206   :  { %1289 = vmatpush3.bf16.msra.mxu0 %v1459_v16 }
 0x207   :  { %1290 = vmatprep.subr.bf16.mxu0 %v1573_v37 }
 0x20a   :  { %1291 = vmatpush3.bf16.msra.mxu0 %v1460_v17 }
 0x2c0   :  { %v689_v3 = vpop.f32.mrb[4].mxu0 }
 0x2c1   :  { %v690_v4 = vadd.f32 %v689_v3, %v488_v1  ;;  %v691_v5 = vpop.f32.mrb[5].mxu0 }
 0x2c2   :  { %v692_v6 = vadd.f32 %v691_v5, %v492_v2  ;;  %v693_v7 = vpop.f32.mrb[6].mxu0 }
 0x2c3   :  { %1043 = vst [vmem:[#allocation6] sm:$0xff] %v690_v4  ;;  %v694_v8 = vpop.f32.mrb[7].mxu0 }
 0x2c4   :  { %v696_v9 = vmul.f32 0.5, %v692_v6  ;;  %1044 = vst [vmem:[#allocation8] sm:$0xff] %v692_v6 }
 0x2c6   :  { %v697_v10 = vmul.f32 1.442695, %v696_v9 }
 0x2c8   :  { %1469 = vpow2.f32 %v697_v10 }
 0x2d2   :  { %v1470_v12 = vpop.eup %1469 }
 0x2d3   :  { %v700_v13 = vmul.f32 %v1470_v12, %v699_v11 }
 0x2d5   :  { %v701_v14 = vadd.f32 %v700_v13, %v690_v4 }
 0x2d7   :  { %v702_v15 = vpack.c.bf16 %v701_v14, %v701_v14 }
 0x2d9   :  { %1273 = vmatmul.mubr.bf16.vlgmr.msra.gmra.mrb[4].mxu1 %v702_v15 }
 0x2da   :  { %1312 = vmatprep.mubr.msk.bf16.mxu1 %vm1574_vm0, %v1573_v37  ;;  %1297 = vmatpush3.bf16.msra.mxu1 %v1461_v18 }
 0x2db   :  { %1298 = vmatprep.subr.bf16.mxu1 %v1573_v37 }
 0x2de   :  { %1299 = vmatpush3.bf16.msra.mxu1 %v1462_v19 }
 0x2df   :  { %1300 = vmatprep.subr.bf16.mxu1 %v1573_v37 }
 0x2e2   :  { %1301 = vmatpush3.bf16.msra.mxu1 %v1463_v20 }
 0x2e3   :  { %1302 = vmatprep.subr.bf16.mxu1 %v1573_v37 }
 0x2e6   :  { %1303 = vmatpush3.bf16.msra.mxu1 %v1464_v21 }
 0x2e7   :  { %1304 = vmatprep.subr.bf16.mxu1 %v1573_v37 }
 0x2ea   :  { %1305 = vmatpush3.bf16.msra.mxu1 %v1465_v22 }
 0x2eb   :  { %1306 = vmatprep.subr.bf16.mxu1 %v1573_v37 }
 0x2ee   :  { %1307 = vmatpush3.bf16.msra.mxu1 %v1466_v23 }
 0x2ef   :  { %1308 = vmatprep.subr.bf16.mxu1 %v1573_v37 }
 0x2f2   :  { %1309 = vmatpush3.bf16.msra.mxu1 %v1467_v32 }
 0x2f3   :  { %1310 = vmatprep.subr.bf16.mxu1 %v1573_v37 }
 0x2f6   :  { %1311 = vmatpush3.bf16.msra.mxu1 %v1468_v33 }
 0x3ac   :  { %v806_v25 = vpop.f32.mrb[4].mxu1 }
 0x3ad   :  { %v807_v26 = vadd.f32 %v1169_v24, %v806_v25  ;;  %v1274_v27 = vpop.f32.mrb[5].mxu1 }
 0x3ae   :  { %v809_v28 = vpop.f32.mrb[6].mxu1 }
 0x3af   :  { %v812_v29 = vmax.f32 %v807_v26, 0.0  ;;  %v1275_v30 = vpop.f32.mrb[7].mxu1 }
 0x3b1   :  { %v813_v31 = vpack.c.bf16 %v812_v29, %v812_v29 }
 0x3b3   :  { %1293 = vmatmul.mubr.bf16.vlgmr.msra.gmra.mrb[8].mxu0 %v813_v31 }
 0x486   :  { %v918_v35 = vpop.f32.mrb[8].mxu0 }
 0x487   :  { %v919_v36 = vadd.f32 %v1194_v34, %v918_v35  ;;  %v1294_v38 = vpop.f32.mrb[9].mxu0 }
 0x488   :  { %v921_v39 = vpop.f32.mrb[10].mxu0 }
 0x489   :  { %v924_v40 = vmax.f32 %v919_v36, 0.0  ;;  %v1295_v41 = vpop.f32.mrb[11].mxu0 }
 0x48b   :  { %v925_v42 = vpack.c.bf16 %v924_v40, %v924_v40 }
 0x48d   :  { %1313 = vmatmul.mubr.bf16.vlgmr.msra.gmra.mrb[8].mxu1 %v925_v42 }
 0x48e   :  { %1508 = shalt.err (!%p1505_p12)
}
 0x48f   :  { %s1509_s10 = scalar_lea.hbm %s1814_s7, 128 }
 0x490   :  { %p1510_p13 = scmp.ne.s32.totalorder %s1814_s7, %s1509_s10  ;;  %p1513_p0 = scmp.lt.u32.totalorder %s1509_s10, %s1814_s7 }
 0x492   :  { %p1515_p1 = pnand %p1513_p0, %p1510_p13 }
 0x494   :  { %1518 = shalt.err (!%p1515_p1)
}
 0x495   :  { %1064 = dma.vmem_to_hbm [thread:$0]  %s1062_s30, 128, %s1814_s7, [#allocation7]  }
 0x496   :  { %s1576_s16 = smov [#allocation8]  }
 0x497   :  { %s1071_s17 = sshll.u32 %s1576_s16, 4  ;;  %s1072_s17 = int_to_ptr.vmem [resolvable:$true] %s1071_s17 }
 0x498   :  { %s1519_s18 = scalar_lea.vmem %s1072_s17, 128  ;;  %p1524_p3 = scmp.lt.s32.totalorder %s1072_s17, %s1072_s17 }
 0x499   :  { %p1520_p2 = scmp.ne.s32.totalorder %s1072_s17, %s1519_s18  ;;  %p1525_p4 = scmp.lt.s32.totalorder %s1519_s18, %s1519_s18 }
 0x49b   :  { %p1526_p5 = por %p1525_p4, %p1524_p3 }
 0x49d   :  { %p1527_p6 = pnand %p1526_p5, %p1520_p2 }
 0x49f   :  { %1530 = shalt.err (!%p1527_p6)
}
 0x4a0   :  { %s1531_s0 = scalar_lea.hbm %s1815_s8, 128 }
 0x4a1   :  { %p1532_p7 = scmp.ne.s32.totalorder %s1815_s8, %s1531_s0  ;;  %p1535_p8 = scmp.lt.u32.totalorder %s1531_s0, %s1815_s8 }
 0x4a3   :  { %p1537_p9 = pnand %p1535_p8, %p1532_p7 }
 0x4a5   :  { %1540 = shalt.err (!%p1537_p9)
}
 0x4a6   :  { %1074 = dma.vmem_to_hbm [thread:$0]  %s1072_s17, 128, %s1815_s8, [#allocation7]   ;;  %v1219_v37 = vld [vmem:[%s1812_s5 + $0x2] ss:$0 sm:$0xff] }
 0x4a7   :  { %s1577_s27 = smov [#allocation5]  }
 0x4a8   :  { %s1051_s28 = sshll.u32 %s1577_s27, 4  ;;  %s1052_s28 = int_to_ptr.vmem [resolvable:$true] %s1051_s28 }
 0x4a9   :  { %s1541_s8 = scalar_lea.vmem %s1052_s28, 128  ;;  %p1546_p11 = scmp.lt.s32.totalorder %s1052_s28, %s1052_s28 }
 0x4aa   :  { %p1542_p10 = scmp.ne.s32.totalorder %s1052_s28, %s1541_s8  ;;  %p1547_p12 = scmp.lt.s32.totalorder %s1541_s8, %s1541_s8 }
 0x4ac   :  { %p1548_p13 = por %p1547_p12, %p1546_p11 }
 0x4ae   :  { %p1549_p0 = pnand %p1548_p13, %p1542_p10 }
 0x560   :  { %v1030_v43 = vpop.f32.mrb[8].mxu1 }
 0x561   :  { %v1031_v44 = vadd.f32 %v1219_v37, %v1030_v43  ;;  %v1314_v45 = vpop.f32.mrb[9].mxu1 }
 0x562   :  { %v1033_v46 = vpop.f32.mrb[10].mxu1 }
 0x563   :  { %v1228_v47 = vmul.f32 -1.442695, %v1031_v44  ;;  %v1315_v48 = vpop.f32.mrb[11].mxu1 }
 0x565   :  { %1471 = vpow2.f32 %v1228_v47 }
 0x56f   :  { %v1472_v49 = vpop.eup %1471 }
 0x570   :  { %v1039_v50 = vadd.f32 1.0, %v1472_v49 }
 0x572   :  { %1473 = vrcp.f32 %v1039_v50 }
 0x57c   :  { %v1474_v51 = vpop.eup %1473 }
 0x57d   :  { %1042 = vst [vmem:[#allocation5] sm:$0xff] %v1474_v51 }
 0x57e   :  { %1552 = shalt.err (!%p1549_p0)
}
 0x57f   :  { %s1553_s30 = scalar_lea.hbm %s1813_s6, 128 }
 0x580   :  { %p1554_p1 = scmp.ne.s32.totalorder %s1813_s6, %s1553_s30  ;;  %p1557_p2 = scmp.lt.u32.totalorder %s1553_s30, %s1813_s6 }
 0x582   :  { %p1559_p3 = pnand %p1557_p2, %p1554_p1 }
 0x584   :  { %1562 = shalt.err (!%p1559_p3)
}
 0x585   :  { %1054 = dma.vmem_to_hbm [thread:$0]  %s1052_s28, 128, %s1813_s6, [#allocation4]  }
 0x586   :  { %1565 = dma.done.wait [#allocation4], 128  }
 0x587   :  { %1566 = vsyncadd [#allocation4], 4294967168 }
 0x588   :  { %1567 = dma.done.wait [#allocation7], 256  }
 0x589   :  { %1568 = vsyncadd [#allocation7], 4294967040 }
 0x58a   :  { %1084 = vsyncpa [#allocation3], 1 }
 0x58b   :  { %1085 = vsyncpa [#allocation4], 1 }
 0x58c   :  { %1086 = vsyncpa [#allocation7], 1 }

</bundles_post_ra>
